<compile_context>
chip_gen: v7x
topology: tpu7x:2x2x1
jax: 0.10.0
libtpu: 0.0.40
codegen_flags: <defaults>
</compile_context>

<pallas_src>
import math
import functools

import jax
import jax.numpy as jnp
from jax.experimental import pallas as pl
from jax.experimental.pallas import tpu as pltpu


# ---------------------------------------------------------------------------
# Activations (match the nn.ReLU / nn.SELU / nn.Tanh / nn.ELU choices).
# ---------------------------------------------------------------------------
def _activation(h, name):
    if name == "relu":
        return jnp.maximum(h, 0.0)
    if name == "tanh":
        return jnp.tanh(h)
    if name == "elu":
        return jnp.where(h > 0, h, jnp.expm1(h))
    if name == "selu":
        alpha = 1.6732632423543772848170429916717
        scale = 1.0507009873554804934193349852946
        return scale * jnp.where(h > 0, h, alpha * jnp.expm1(h))
    raise ValueError(f"unknown activation {name}")


# ---------------------------------------------------------------------------
# Fused MLP kernel, transposed (batch-in-lanes) orientation.
# refs layout: xT, (wT_0, b_0), (wT_1, b_1), ..., (wT_L, b_L), outT
#   xT  : (F, TILE_B)        bf16
#   wT_i: (out_i, in_i)      bf16, resident in VMEM (constant index_map)
#   b_i : (out_i, 1)         f32,  resident
#   outT: (classes, TILE_B)  f32
# ---------------------------------------------------------------------------
def _mlp_kernel(*refs, n_layers, activation):
    x_ref = refs[0]
    out_ref = refs[-1]
    param_refs = refs[1:-1]

    h = x_ref[...]                                     # (F, TILE_B) bf16
    for li in range(n_layers):
        w_ref = param_refs[2 * li]                     # (out, in) bf16
        b_ref = param_refs[2 * li + 1]                 # (out, 1)  f32
        # MXU: (out, in) @ (in, TILE_B) -> (out, TILE_B), f32 accumulation.
        z = jnp.dot(w_ref[...], h, preferred_element_type=jnp.float32)
        z = z + b_ref[...]                             # (out,1) broadcasts over lanes
        if li < n_layers - 1:                          # final "softmax_layer" is plain Linear
            h = _activation(z, activation).astype(jnp.bfloat16)
        else:
            out_ref[...] = z.astype(out_ref.dtype)


def _round_up(n, m):
    return ((n + m - 1) // m) * m


def _choose_tile(batch, max_tile=16384):
    """128-aligned batch tile; >=2 equal blocks when the batch allows it."""
    padded128 = _round_up(max(batch, 1), 128)
    if padded128 <= 128:
        n_blocks = 1
    else:
        # At least 2 blocks (v7x megacore), more if a single block would
        # exceed max_tile.  Padding overhead is bounded by n_blocks*128 rows.
        n_blocks = max(2, pl.cdiv(padded128, max_tile))
    tile = _round_up(pl.cdiv(padded128, n_blocks), 128)
    padded = n_blocks * tile
    return tile, padded, n_blocks


def mlp_forward(x, params, activation, *, tile_b=None):
    """x: (B, 1, num_sample_pts) or (B, num_sample_pts).
    params: list of (W, b) with W shaped (in, out), b shaped (1, out).
    Returns (B, classes) -- identical to PyTorch forward() + .squeeze(1)."""
    if x.ndim == 3:
        # PyTorch forward ends with x.squeeze(1); middle dim is size 1.
        x = x.reshape(x.shape[0], x.shape[-1])

    batch, feat = x.shape
    classes = params[-1][0].shape[1]
    n_layers = len(params)

    # Hoisted weight prep: transpose to (out, in), cast to bf16; bias as
    # (out, 1) f32 column for lane-broadcast inside the kernel.
    flat_params = []
    for w, b in params:
        flat_params.append(jnp.asarray(w, jnp.float32).T.astype(jnp.bfloat16))  # (out, in)
        flat_params.append(jnp.asarray(b, jnp.float32).reshape(-1, 1))          # (out, 1)

    # Batch tiling: 128-aligned lanes, >=2 blocks for v7x megacore when possible.
    if tile_b is None:
        tile_b, padded, _ = _choose_tile(batch)
    else:
        tile_b = _round_up(max(tile_b, 128), 128)
        padded = _round_up(max(batch, 1), tile_b)

    # Transposed, bf16 input: (F, padded_batch); padded columns are zeros.
    x_t = jnp.asarray(x, jnp.float32).astype(jnp.bfloat16).T               # (F, B)
    if padded != batch:
        x_t = jnp.pad(x_t, ((0, 0), (0, padded - batch)))

    grid = (padded // tile_b,)

    kernel = functools.partial(_mlp_kernel, n_layers=n_layers,
                               activation=activation)

    param_specs = [pl.BlockSpec(p.shape, lambda i: (0, 0)) for p in flat_params]

    out_t = pl.pallas_call(
        kernel,
        out_shape=jax.ShapeDtypeStruct((classes, padded), jnp.float32),
        grid=grid,
        in_specs=[pl.BlockSpec((feat, tile_b), lambda i: (0, i))] + param_specs,
        out_specs=pl.BlockSpec((classes, tile_b), lambda i: (0, i)),
        compiler_params=pltpu.CompilerParams(
            dimension_semantics=("parallel",),          # v7x: shard batch grid over 2 TCs
            vmem_limit_bytes=32 * 1024 * 1024,          # working set is a few MiB at most
        ),
    )(x_t, *flat_params)

    # (classes, padded) -> (batch, classes); small XLA transpose in the wrapper.
    return out_t.T[:batch]


# ---------------------------------------------------------------------------
# Deterministic parameter init (mirrors nn.Linear's U(-1/sqrt(fan_in), ...)).
# ---------------------------------------------------------------------------
def init_mlp_params(key, num_sample_pts, neurons, num_layers, classes):
    params = []
    in_dim = num_sample_pts
    for _ in range(num_layers):
        key, kw, kb = jax.random.split(key, 3)
        bound = 1.0 / math.sqrt(in_dim)
        w = jax.random.uniform(kw, (in_dim, neurons), jnp.float32, -bound, bound)
        b = jax.random.uniform(kb, (1, neurons), jnp.float32, -bound, bound)
        params.append((w, b))
        in_dim = neurons
    key, kw, kb = jax.random.split(key, 3)
    bound = 1.0 / math.sqrt(in_dim)
    w = jax.random.uniform(kw, (in_dim, classes), jnp.float32, -bound, bound)
    b = jax.random.uniform(kb, (1, classes), jnp.float32, -bound, bound)
    params.append((w, b))
    return params


# Pure-JAX f32 reference for correctness checks.
def mlp_reference(x, params, activation):
    if x.ndim == 3:
        x = x.reshape(x.shape[0], x.shape[-1])
    h = x
    for w, b in params[:-1]:
        h = h @ w + b
        h = _activation(h, activation)
    w, b = params[-1]
    return h @ w + b


if __name__ == "__main__":
    # search_space = {'layers': 2, 'neurons': 32, 'activation': 'relu'}
    NUM_LAYERS = 2
    NEURONS = 32
    ACTIVATION = "relu"
    NUM_SAMPLE_PTS = 16
    CLASSES = 8
    BATCH = 2

    key = jax.random.PRNGKey(0)
    key, kx = jax.random.split(key)
    # PyTorch-style input: (batch, 1, num_sample_pts)
    x = jax.random.normal(kx, (BATCH, 1, NUM_SAMPLE_PTS), jnp.float32)

    params = init_mlp_params(key, NUM_SAMPLE_PTS, NEURONS, NUM_LAYERS, CLASSES)

    out = mlp_forward(x, params, ACTIVATION)
    out = jax.block_until_ready(out)
    ref = mlp_reference(x, params, ACTIVATION)
    assert out.shape == (BATCH, CLASSES), out.shape
    # bf16 MXU operands (f32 accumulation + f32 bias) -> ~1e-2 agreement.
    assert jnp.allclose(out, ref, atol=2e-2, rtol=2e-2), "mismatch vs reference"

    # Larger batch that is NOT a multiple of 128: exercises the multi-block
    # batch grid (2 blocks -> both v7x TCs), resident weights, and the
    # pad/transpose/slice path.
    key, kx2 = jax.random.split(key)
    x_big = jax.random.normal(kx2, (1000, 1, NUM_SAMPLE_PTS), jnp.float32)
    out_big = jax.block_until_ready(mlp_forward(x_big, params, ACTIVATION))
    ref_big = mlp_reference(x_big, params, ACTIVATION)
    assert out_big.shape == (1000, CLASSES), out_big.shape
    assert jnp.allclose(out_big, ref_big, atol=2e-2, rtol=2e-2), \
        "mismatch vs reference (big batch)"

    print("KERNEL_OK")
</pallas_src>

<mosaic_0001>
module attributes {stable_mosaic.version = 11 : i64} {
  func.func @_mlp_kernel(%arg0: i32, %arg1: memref<16x128xbf16, #tpu.memory_space<vmem>>, %arg2: memref<32x16xbf16, #tpu.memory_space<vmem>>, %arg3: memref<32x1xf32, #tpu.memory_space<vmem>>, %arg4: memref<32x32xbf16, #tpu.memory_space<vmem>>, %arg5: memref<32x1xf32, #tpu.memory_space<vmem>>, %arg6: memref<8x32xbf16, #tpu.memory_space<vmem>>, %arg7: memref<8x1xf32, #tpu.memory_space<vmem>>, %arg8: memref<8x128xf32, #tpu.memory_space<vmem>>) attributes {dimension_semantics = [#tpu.dimension_semantics<parallel>], iteration_bounds = array<i64: 1>, scalar_prefetch = 0 : i64, scratch_operands = 0 : i64, tpu.core_type = #tpu.core_type<tc>, window_params = [{transform_indices = @transform_0, window_bounds = array<i64: 16, 128>}, {pipeline_mode = #tpu.pipeline_mode<synchronous>, transform_indices = @transform_1, window_bounds = array<i64: 32, 16>}, {pipeline_mode = #tpu.pipeline_mode<synchronous>, transform_indices = @transform_2, window_bounds = array<i64: 32, 1>}, {pipeline_mode = #tpu.pipeline_mode<synchronous>, transform_indices = @transform_3, window_bounds = array<i64: 32, 32>}, {pipeline_mode = #tpu.pipeline_mode<synchronous>, transform_indices = @transform_4, window_bounds = array<i64: 32, 1>}, {pipeline_mode = #tpu.pipeline_mode<synchronous>, transform_indices = @transform_5, window_bounds = array<i64: 8, 32>}, {pipeline_mode = #tpu.pipeline_mode<synchronous>, transform_indices = @transform_6, window_bounds = array<i64: 8, 1>}, {transform_indices = @transform_7, window_bounds = array<i64: 8, 128>}]} {
    %c0 = arith.constant 0 : index
    %c0_0 = arith.constant 0 : index
    %0 = vector.load %arg1[%c0, %c0_0] : memref<16x128xbf16, #tpu.memory_space<vmem>>, vector<16x128xbf16>
    %c0_1 = arith.constant 0 : index
    %c0_2 = arith.constant 0 : index
    %1 = vector.load %arg2[%c0_1, %c0_2] : memref<32x16xbf16, #tpu.memory_space<vmem>>, vector<32x16xbf16>
    %cst = arith.constant dense<0.000000e+00> : vector<32x128xf32>
    %2 = tpu.matmul %1, %0, %cst {dimension_numbers = #tpu.dot_dimension_numbers<[1], [0], [0], [1], [0, 0, 1, 1], [], []>} : vector<32x16xbf16>, vector<16x128xbf16>, vector<32x128xf32> -> vector<32x128xf32>
    %c0_3 = arith.constant 0 : index
    %c0_4 = arith.constant 0 : index
    %3 = vector.load %arg3[%c0_3, %c0_4] : memref<32x1xf32, #tpu.memory_space<vmem>>, vector<32x1xf32>
    %4 = vector.broadcast %3 : vector<32x1xf32> to vector<32x128xf32>
    %5 = arith.addf %2, %4 : vector<32x128xf32>
    %cst_5 = arith.constant 0.000000e+00 : f32
    %6 = vector.broadcast %cst_5 : f32 to vector<32x128xf32>
    %7 = arith.maximumf %5, %6 : vector<32x128xf32>
    %8 = arith.truncf %7 : vector<32x128xf32> to vector<32x128xbf16>
    %c0_6 = arith.constant 0 : index
    %c0_7 = arith.constant 0 : index
    %9 = vector.load %arg4[%c0_6, %c0_7] : memref<32x32xbf16, #tpu.memory_space<vmem>>, vector<32x32xbf16>
    %cst_8 = arith.constant dense<0.000000e+00> : vector<32x128xf32>
    %10 = tpu.matmul %9, %8, %cst_8 {dimension_numbers = #tpu.dot_dimension_numbers<[1], [0], [0], [1], [0, 0, 1, 1], [], []>} : vector<32x32xbf16>, vector<32x128xbf16>, vector<32x128xf32> -> vector<32x128xf32>
    %c0_9 = arith.constant 0 : index
    %c0_10 = arith.constant 0 : index
    %11 = vector.load %arg5[%c0_9, %c0_10] : memref<32x1xf32, #tpu.memory_space<vmem>>, vector<32x1xf32>
    %12 = vector.broadcast %11 : vector<32x1xf32> to vector<32x128xf32>
    %13 = arith.addf %10, %12 : vector<32x128xf32>
    %cst_11 = arith.constant 0.000000e+00 : f32
    %14 = vector.broadcast %cst_11 : f32 to vector<32x128xf32>
    %15 = arith.maximumf %13, %14 : vector<32x128xf32>
    %16 = arith.truncf %15 : vector<32x128xf32> to vector<32x128xbf16>
    %c0_12 = arith.constant 0 : index
    %c0_13 = arith.constant 0 : index
    %17 = vector.load %arg6[%c0_12, %c0_13] : memref<8x32xbf16, #tpu.memory_space<vmem>>, vector<8x32xbf16>
    %cst_14 = arith.constant dense<0.000000e+00> : vector<8x128xf32>
    %18 = tpu.matmul %17, %16, %cst_14 {dimension_numbers = #tpu.dot_dimension_numbers<[1], [0], [0], [1], [0, 0, 1, 1], [], []>} : vector<8x32xbf16>, vector<32x128xbf16>, vector<8x128xf32> -> vector<8x128xf32>
    %c0_15 = arith.constant 0 : index
    %c0_16 = arith.constant 0 : index
    %19 = vector.load %arg7[%c0_15, %c0_16] : memref<8x1xf32, #tpu.memory_space<vmem>>, vector<8x1xf32>
    %20 = vector.broadcast %19 : vector<8x1xf32> to vector<8x128xf32>
    %21 = arith.addf %18, %20 : vector<8x128xf32>
    %c0_17 = arith.constant 0 : index
    %c0_18 = arith.constant 0 : index
    %22 = vector.load %arg8[%c0_17, %c0_18] : memref<8x128xf32, #tpu.memory_space<vmem>>, vector<8x128xf32>
    tpu.vector_store %arg8[%c0_17, %c0_18], %21 {strides = array<i32>} : memref<8x128xf32, #tpu.memory_space<vmem>>, vector<8x128xf32>,
    return
  }
  func.func @transform_0(%arg0: i32) -> (i32, i32) {
    %c0_i32 = arith.constant 0 : i32
    %c0_i32_0 = arith.constant 0 : i32
    return %c0_i32, %arg0 : i32, i32
  }
  func.func @transform_1(%arg0: i32) -> (i32, i32) {
    %c0_i32 = arith.constant 0 : i32
    %c0_i32_0 = arith.constant 0 : i32
    %c0_i32_1 = arith.constant 0 : i32
    return %c0_i32, %c0_i32_0 : i32, i32
  }
  func.func @transform_2(%arg0: i32) -> (i32, i32) {
    %c0_i32 = arith.constant 0 : i32
    %c0_i32_0 = arith.constant 0 : i32
    %c0_i32_1 = arith.constant 0 : i32
    return %c0_i32, %c0_i32_0 : i32, i32
  }
  func.func @transform_3(%arg0: i32) -> (i32, i32) {
    %c0_i32 = arith.constant 0 : i32
    %c0_i32_0 = arith.constant 0 : i32
    %c0_i32_1 = arith.constant 0 : i32
    return %c0_i32, %c0_i32_0 : i32, i32
  }
  func.func @transform_4(%arg0: i32) -> (i32, i32) {
    %c0_i32 = arith.constant 0 : i32
    %c0_i32_0 = arith.constant 0 : i32
    %c0_i32_1 = arith.constant 0 : i32
    return %c0_i32, %c0_i32_0 : i32, i32
  }
  func.func @transform_5(%arg0: i32) -> (i32, i32) {
    %c0_i32 = arith.constant 0 : i32
    %c0_i32_0 = arith.constant 0 : i32
    %c0_i32_1 = arith.constant 0 : i32
    return %c0_i32, %c0_i32_0 : i32, i32
  }
  func.func @transform_6(%arg0: i32) -> (i32, i32) {
    %c0_i32 = arith.constant 0 : i32
    %c0_i32_0 = arith.constant 0 : i32
    %c0_i32_1 = arith.constant 0 : i32
    return %c0_i32, %c0_i32_0 : i32, i32
  }
  func.func @transform_7(%arg0: i32) -> (i32, i32) {
    %c0_i32 = arith.constant 0 : i32
    %c0_i32_0 = arith.constant 0 : i32
    return %c0_i32, %arg0 : i32, i32
  }
}

</mosaic_0001>

<bundles_post_ra>
// kernel: tpu_custom_call.1
= control target key start
LH: loop header
LB: loop body
LE: loop exit
PB: predicated region body
PF: predicated region fallthrough
CT: control target
= control target key end

     0   :  { %vm74_vm0 = vcmask 130048   ;;  %v378_v3 = vmov 0   ;;  %s482_s0 = inlined_call_operand.vmem [shape: bf16[16,128], index: 0, kind: input, shape index: {}]   ;;  %s483_s1 = inlined_call_operand.vmem [shape: bf16[32,16], index: 1, kind: input, shape index: {}]   ;;  %s484_s2 = inlined_call_operand.vmem [shape: f32[32,1], index: 2, kind: input, shape index: {}]   ;;  %s485_s3 = inlined_call_operand.vmem [shape: bf16[32,32], index: 3, kind: input, shape index: {}]   ;;  %s486_s4 = inlined_call_operand.vmem [shape: f32[32,1], index: 4, kind: input, shape index: {}]   ;;  %s487_s5 = inlined_call_operand.vmem [shape: bf16[8,32], index: 5, kind: input, shape index: {}]   ;;  %s488_s6 = inlined_call_operand.vmem [shape: f32[8,1], index: 6, kind: input, shape index: {}]   ;;  %s489_s7 = inlined_call_operand.hbm [shape: f32[8,128], index: 7, kind: output, shape index: {}]  }
   0x1   :  { %v349_v0 = vld [vmem:[%s482_s0] sm:$0xff]   ;;  %v351_v2 = vld [vmem:[%s483_s1 + $0x8] sm:$0xff]   ;;  %347 = vset.pattern.permute.xlu0 %v378_v3  ;;  %v36_v5 = vld [vmem:[%s484_s2 + $0x10] sm:$0xff]  ;;  %348 = vset.pattern.permute.xlu1 %v378_v3 }
   0x2   :  { %v350_v1 = vld [vmem:[%s483_s1] sm:$0xff]   ;;  %321 = vmatprep.subr.bf16.mxu0 %v349_v0  ;;  %v35_v6 = vld [vmem:[%s484_s2 + $0x8] sm:$0xff]  ;;  %50 = vperm.xlu1 %348, %v36_v5   ;;  %v37_v7 = vld [vmem:[%s484_s2 + $0x18] sm:$0xff] }
   0x3   :  { %322 = vmatpush3.bf16.msra.mxu0 %v349_v0  ;;  %323 = vmatprep.mubr.msk.bf16.mxu0 %vm74_vm0, %v350_v1  ;;  %v34_v4 = vld [vmem:[%s484_s2] sm:$0xff] }
   0x4   :  { %40 = vperm.xlu0 %347, %v34_v4  }
   0x6   :  { %324 = vmatmul.mubr.msk.bf16.vlgmr.msra.gmra.mrb[0].mxu0 %vm74_vm0, %v351_v2 }
   0x7   :  { %12 = vsyncpa [#allocation3], 0  ;;  %v140_v8 = vld [vmem:[%s486_s4] sm:$0xff]  ;;  %55 = vperm.xlu1 %348, %v37_v7   ;;  %v141_v9 = vld [vmem:[%s486_s4 + $0x8] sm:$0xff]  ;;  %vm174_vm1 = vcmask 261120   ;;  %v379_v33 = vmov 0.0  }
   0x8   :  { %45 = vperm.xlu0 %347, %v35_v6   ;;  %v142_v10 = vld [vmem:[%s486_s4 + $0x10] sm:$0xff]  ;;  %v143_v11 = vld [vmem:[%s486_s4 + $0x18] sm:$0xff]  ;;  %v237_v12 = vld [vmem:[%s488_s6] sm:$0xff]  ;;  %335 = vmatprep.subr.bf16.mxu0 %v379_v33  ;;  %vm380_vm2 = vmmov 0   ;;  %s381_s25 = smov [#allocation2]  }
   0x9   :  { %v352_v13 = vld [vmem:[%s485_s3] sm:$0xff]   ;;  %v353_v32 = vld [vmem:[%s485_s3 + $0x8] sm:$0xff]   ;;  %339 = vmatprep.mubr.msk.bf16.mxu0 %vm380_vm2, %v379_v33  ;;  %s293_s26 = sshll.u32 %s381_s25, 4  ;;  %s294_s26 = int_to_ptr.vmem [resolvable:$true] %s293_s26 }
   0xa   :  { %331 = vmatprep.mubr.msk.bf16.mxu1 %vm174_vm1, %v352_v13  ;;  %v236_v52 = vld [vmem:[%s487_s5] sm:$0xf]  ;;  %s354_s27 = scalar_lea.vmem %s294_s26, 128  ;;  %p359_p1 = scmp.lt.s32.totalorder %s294_s26, %s294_s26 }
   0xb   :  { %151 = vperm.xlu1 %348, %v141_v9   ;;  %p355_p0 = scmp.ne.s32.totalorder %s294_s26, %s354_s27  ;;  %p360_p2 = scmp.lt.s32.totalorder %s354_s27, %s354_s27 }
   0xc   :  { %146 = vperm.xlu0 %347, %v140_v8  }
   0xd   :  { %p361_p3 = por %p360_p2, %p359_p1 }
   0xf   :  { %161 = vperm.xlu1 %348, %v143_v11   ;;  %p362_p4 = pnand %p361_p3, %p355_p0 }
  0x10   :  { %156 = vperm.xlu0 %347, %v142_v10  }
  0x14   :  { %240 = vperm.xlu0 %347, %v237_v12  }
  0x81   :  { %v51_v14 = vpop.permute.xlu1 %50 }
  0x83   :  { %v41_v15 = vpop.permute.xlu0 %40 }
  0x86   :  { %v56_v19 = vpop.permute.xlu1 %55 }
  0x87   :  { %v46_v22 = vpop.permute.xlu0 %45 }
  0x8a   :  { %v152_v35 = vpop.permute.xlu1 %151 }
  0x8b   :  { %v147_v34 = vpop.permute.xlu0 %146 }
  0x8e   :  { %v162_v40 = vpop.permute.xlu1 %161 }
  0x8f   :  { %v157_v36 = vpop.permute.xlu0 %156 }
  0x93   :  { %v241_v53 = vpop.permute.xlu0 %240 }
  0xd9   :  { %v325_v16 = vpop.f32.mrb[0].mxu0 }
  0xda   :  { %v124_v17 = vadd.f32 %v325_v16, %v51_v14  ;;  %v115_v18 = vpop.f32.mrb[1].mxu0 }
  0xdb   :  { %v116_v20 = vadd.f32 %v115_v18, %v41_v15  ;;  %v326_v21 = vpop.f32.mrb[2].mxu0 }
  0xdc   :  { %v127_v23 = vadd.f32 %v326_v21, %v56_v19  ;;  %v118_v24 = vpop.f32.mrb[3].mxu0  ;;  %v132_v26 = vmax.f32 %v124_v17, 0.0 }
  0xdd   :  { %v119_v25 = vadd.f32 %v118_v24, %v46_v22  ;;  %v130_v28 = vmax.f32 %v116_v20, 0.0 }
  0xde   :  { %v133_v27 = vmax.f32 %v127_v23, 0.0 }
  0xdf   :  { %v131_v29 = vmax.f32 %v119_v25, 0.0 }
  0xe0   :  { %v135_v30 = vpack.c.bf16 %v133_v27, %v132_v26 }
  0xe1   :  { %v134_v31 = vpack.c.bf16 %v131_v29, %v130_v28 }
  0xe3   :  { %327 = vmatprep.subr.bf16.mxu1 %v134_v31 }
  0xe4   :  { %328 = vmatpush3.bf16.msra.mxu1 %v134_v31 }
  0xe5   :  { %329 = vmatprep.subr.bf16.mxu1 %v135_v30 }
  0xe8   :  { %330 = vmatpush3.bf16.msra.mxu1 %v135_v30 }
  0xeb   :  { %332 = vmatmul.mubr.msk.bf16.vlgmr.msra.gmra.mrb[0].mxu1 %vm174_vm1, %v353_v32 }
 0x1be   :  { %v333_v37 = vpop.f32.mrb[0].mxu1 }
 0x1bf   :  { %v224_v38 = vadd.f32 %v333_v37, %v157_v36  ;;  %v215_v39 = vpop.f32.mrb[1].mxu1 }
 0x1c0   :  { %v216_v41 = vadd.f32 %v215_v39, %v147_v34  ;;  %v334_v42 = vpop.f32.mrb[2].mxu1 }
 0x1c1   :  { %v227_v43 = vadd.f32 %v334_v42, %v162_v40  ;;  %v218_v44 = vpop.f32.mrb[3].mxu1  ;;  %v232_v46 = vmax.f32 %v224_v38, 0.0 }
 0x1c2   :  { %v219_v45 = vadd.f32 %v218_v44, %v152_v35  ;;  %v230_v48 = vmax.f32 %v216_v41, 0.0 }
 0x1c3   :  { %v233_v47 = vmax.f32 %v227_v43, 0.0 }
 0x1c4   :  { %v231_v49 = vmax.f32 %v219_v45, 0.0 }
 0x1c5   :  { %v235_v50 = vpack.c.bf16 %v233_v47, %v232_v46 }
 0x1c6   :  { %v234_v51 = vpack.c.bf16 %v231_v49, %v230_v48 }
 0x1c8   :  { %336 = vmatpush3.bf16.msra.mxu0 %v234_v51 }
 0x1c9   :  { %337 = vmatprep.subr.bf16.mxu0 %v379_v33 }
 0x1cc   :  { %338 = vmatpush3.bf16.msra.mxu0 %v235_v50 }
 0x1cf   :  { %340 = vmatmul.mubr.msk.bf16.vlgmr.msra.gmra.mrb[4].mxu0 %vm174_vm1, %v236_v52 }
 0x2a2   :  { %v280_v54 = vpop.f32.mrb[4].mxu0 }
 0x2a3   :  { %v281_v55 = vadd.f32 %v280_v54, %v241_v53  ;;  %v341_v56 = vpop.f32.mrb[5].mxu0 }
 0x2a4   :  { %v283_v57 = vpop.f32.mrb[6].mxu0 }
 0x2a5   :  { %286 = vst [vmem:[#allocation2] sm:$0xff] %v281_v55  ;;  %v342_v58 = vpop.f32.mrb[7].mxu0 }
 0x2a6   :  { %365 = shalt.err (!%p362_p4)
}
 0x2a7   :  { %s366_s29 = scalar_lea.hbm %s489_s7, 128 }
 0x2a8   :  { %p367_p5 = scmp.ne.s32.totalorder %s489_s7, %s366_s29  ;;  %p370_p6 = scmp.lt.u32.totalorder %s366_s29, %s489_s7 }
 0x2aa   :  { %p372_p7 = pnand %p370_p6, %p367_p5 }
 0x2ac   :  { %375 = shalt.err (!%p372_p7)
}
 0x2ad   :  { %296 = dma.vmem_to_hbm [thread:$0]  %s294_s26, 128, %s489_s7, [#allocation3]  }
 0x2ae   :  { %376 = dma.done.wait [#allocation3], 128  }
 0x2af   :  { %377 = vsyncadd [#allocation3], 4294967168 }
 0x2b0   :  { %300 = vsyncpa [#allocation3], 1 }

</bundles_post_ra>
